<compile_context>
chip_gen: v7x
topology: tpu7x:2x2x1
jax: 0.10.0
libtpu: 0.0.40
codegen_flags: <defaults>
</compile_context>

<pallas_src>
import jax
import jax.numpy as jnp
from jax.experimental import pallas as pl
from jax.experimental.pallas import tpu as pltpu


def _cdiv(a, b):
    return -(-a // b)


# ----------------------------------------------------------------------------
# Kernel: one row tile x one pixel-shuffle sub-row.
#   x_ref : (TM, Cin)          raw (un-shuffled) hidden_states rows
#   w_ref : (1, Cin, KB)       folded weight slice for this sub-row
#   b_ref : (1, 1, KB)         folded bias slice
#   o_ref : fused: (T, 1, W, f*Cout)   (a view-block of the final tensor)
#           fallback: (TM, f^2*Cout)
# ----------------------------------------------------------------------------
def _proj_kernel(x_ref, w_ref, b_ref, o_ref):
    acc = jnp.dot(x_ref[...], w_ref[0], preferred_element_type=jnp.float32)
    acc = acc + b_ref[0].astype(jnp.float32)
    o_ref[...] = acc.reshape(o_ref.shape).astype(o_ref.dtype)


def _vmem_budget():
    try:
        cap = int(pltpu.get_tpu_info().vmem_capacity_bytes)
    except Exception:
        cap = 64 * 1024 * 1024          # conservative (v7x per-TC)
    return (cap * 3) // 4


# ----------------------------------------------------------------------------
# UpsampleBlock forward
# ----------------------------------------------------------------------------
def upsample_block(hidden_states, weight, bias, *, factor=2, shortcut=True,
                   tile_rows=512):
    """hidden_states: (B, H, W, Cin) NHWC.  weight: (Cout, Cin // factor^2)
    (PyTorch nn.Linear layout).  bias: (Cout,).  Returns (B, H*f, W*f, Cout)."""
    bsz, hh, ww, cin = hidden_states.shape
    cout = weight.shape[0]
    f = factor
    f2 = f * f
    assert cin % f2 == 0, "in_channels must be divisible by factor**2"
    kout = f2 * cout
    fc = f * cout

    # ---- Fold PixelShuffle + Linear (+ shortcut) into one (Cin, Kout) weight.
    # Columns are s-major: q = (a*f + c2)*Cout + o, i.e. column q of input row
    # (b, h, w) is exactly the final output element (b, h*f + a, w*f + c2, o).
    f32 = jnp.float32
    wt = weight.astype(f32).T                               # (Cin//f^2, Cout)
    eye = jnp.eye(f2, dtype=f32)
    w_fold = (wt[:, None, None, :] * eye[None, :, :, None]).reshape(cin, kout)
    bias_fold = jnp.tile(bias.astype(f32), f2)              # column q -> bias[q % Cout]
    if shortcut:
        assert kout % cin == 0, \
            "out_channels * factor**2 must be divisible by in_channels"
        repeats = kout // cin
        q = jnp.arange(kout)
        src = ((q % cout) * f2 + q // cout) // repeats      # hidden channel feeding col q
        w_fold = w_fold + jax.nn.one_hot(src, cin, dtype=f32).T   # add in f32, cast once
    w_fold = w_fold.astype(weight.dtype)
    bias_fold = bias_fold.astype(bias.dtype)

    x_flat = hidden_states.reshape(bsz * hh * ww, cin)      # layout-only reshape
    bh = bsz * hh
    x_item = x_flat.dtype.itemsize
    w_item = w_fold.dtype.itemsize
    budget = _vmem_budget()
    tile_rows = max(8, (int(tile_rows) // 8) * 8)

    if ww % 8 == 0:
        # ------------------ fused-output path ---------------------------------
        # Kernel writes the final pixel-shuffled layout through a
        # (B*H, f, W, f*Cout) row-major view of (B, H*f, W*f, Cout).
        t = max(1, min(tile_rows // ww, bh))                 # raster rows per tile
        if bh >= 2:
            t = min(t, _cdiv(bh, 2))                         # >=2 row tiles (v7x megacore)

        def vmem_need(t_):
            tm_ = t_ * ww
            return (2 * tm_ * cin * x_item                   # x tiles (double buffered)
                    + 2 * tm_ * fc * x_item                  # out tiles
                    + tm_ * fc * 4                           # f32 accumulator
                    + 2 * (cin + 1) * fc * w_item)           # per-sub-row weight + bias

        while t > 1 and vmem_need(t) > budget:
            t = _cdiv(t, 2)
        tm = t * ww
        num_tiles = _cdiv(bh, t)
        vmem_limit = int(min(budget, max(4 * vmem_need(t), 32 * 1024 * 1024)))

        w3 = w_fold.reshape(cin, f, fc).transpose(1, 0, 2)   # (f, Cin, f*Cout)
        b3 = bias_fold.reshape(f, 1, fc)
        cost = pl.CostEstimate(
            flops=2 * bh * ww * cin * kout,
            transcendentals=0,
            bytes_accessed=bh * ww * (cin + kout) * x_item
            + f * num_tiles * (cin + 1) * fc * w_item,
        )

        out_view = pl.pallas_call(
            _proj_kernel,
            out_shape=jax.ShapeDtypeStruct((bh, f, ww, fc), x_flat.dtype),
            grid_spec=pltpu.PrefetchScalarGridSpec(
                num_scalar_prefetch=0,
                grid=(num_tiles, f),
                in_specs=[
                    pl.BlockSpec((tm, cin), lambda i, a: (i, 0)),
                    pl.BlockSpec((1, cin, fc), lambda i, a: (a, 0, 0)),
                    pl.BlockSpec((1, 1, fc), lambda i, a: (a, 0, 0)),
                ],
                out_specs=pl.BlockSpec((t, 1, ww, fc), lambda i, a: (i, a, 0, 0)),
            ),
            compiler_params=pltpu.CompilerParams(
                dimension_semantics=("parallel", "arbitrary"),
                vmem_limit_bytes=vmem_limit,
            ),
            cost_estimate=cost,
        )(x_flat, w3, b3)
        # Order-preserving (free) reshape: (B*H, f, W, f*Cout) == final tensor.
        return out_view.reshape(bsz, hh * f, ww * f, cout)

    # ------------------ fallback path (W not a multiple of 8) -----------------
    # TODO(synk): for ragged W the final channel->spatial un-shuffle stays as
    # one XLA transpose pass; the fused path above removes it.
    n = bh * ww
    tm = n if n <= tile_rows else tile_rows
    num_tiles = _cdiv(n, tm)
    need = (2 * tm * (cin + kout) * x_item + tm * kout * 4
            + 2 * (cin + 1) * kout * w_item)
    vmem_limit = int(min(budget, max(4 * need, 32 * 1024 * 1024)))
    out_flat = pl.pallas_call(
        _proj_kernel,
        out_shape=jax.ShapeDtypeStruct((n, kout), x_flat.dtype),
        grid_spec=pltpu.PrefetchScalarGridSpec(
            num_scalar_prefetch=0,
            grid=(num_tiles,),
            in_specs=[
                pl.BlockSpec((tm, cin), lambda i: (i, 0)),
                pl.BlockSpec((1, cin, kout), lambda i: (0, 0, 0)),
                pl.BlockSpec((1, 1, kout), lambda i: (0, 0, 0)),
            ],
            out_specs=pl.BlockSpec((tm, kout), lambda i: (i, 0)),
        ),
        compiler_params=pltpu.CompilerParams(
            dimension_semantics=("parallel",),
            vmem_limit_bytes=vmem_limit,
        ),
        cost_estimate=pl.CostEstimate(
            flops=2 * n * cin * kout, transcendentals=0,
            bytes_accessed=n * (cin + kout) * x_item + (cin + 1) * kout * w_item),
    )(x_flat, w_fold.reshape(1, cin, kout), bias_fold.reshape(1, 1, kout))
    out = out_flat.reshape(bsz, hh, ww, f, f, cout)
    out = jnp.transpose(out, (0, 1, 3, 2, 4, 5))
    return out.reshape(bsz, hh * f, ww * f, cout)


# ----------------------------------------------------------------------------
# Pure-JAX reference (mirrors the PyTorch forward)
# ----------------------------------------------------------------------------
def pixel_shuffle(x, f):
    b, h, w, c = x.shape
    x = x.reshape(b, h, w, c // (f * f), f, f)
    x = jnp.transpose(x, (0, 1, 4, 2, 5, 3))
    return x.reshape(b, h * f, w * f, c // (f * f))


def upsample_block_ref(hidden_states, weight, bias, *, factor=2, shortcut=True):
    f = factor
    cout = weight.shape[0]
    cin = hidden_states.shape[-1]
    x = pixel_shuffle(hidden_states, f) @ weight.T + bias
    if shortcut:
        repeats = cout * f * f // cin
        y = pixel_shuffle(jnp.repeat(hidden_states, repeats, axis=3), f)
        return x + y
    return x


if __name__ == "__main__":
    B, H, W = 2, 8, 8
    IN_CH, OUT_CH, FACTOR = 32, 32, 2        # f^2 * Cout = 128

    key = jax.random.PRNGKey(0)
    k_x, k_w, k_b = jax.random.split(key, 3)
    hidden_states = jax.random.normal(k_x, (B, H, W, IN_CH), dtype=jnp.float32)
    weight = jax.random.normal(k_w, (OUT_CH, IN_CH // FACTOR**2), dtype=jnp.float32) * 0.1
    bias = jax.random.normal(k_b, (OUT_CH,), dtype=jnp.float32) * 0.1

    out = upsample_block(hidden_states, weight, bias, factor=FACTOR, shortcut=True)
    out = jax.block_until_ready(out)
    ref = upsample_block_ref(hidden_states, weight, bias, factor=FACTOR, shortcut=True)
    assert out.shape == (B, H * FACTOR, W * FACTOR, OUT_CH), out.shape
    assert jnp.allclose(out, ref, atol=2e-4, rtol=1e-4), "mismatch vs reference (shortcut=True)"

    out2 = upsample_block(hidden_states, weight, bias, factor=FACTOR, shortcut=False)
    out2 = jax.block_until_ready(out2)
    ref2 = upsample_block_ref(hidden_states, weight, bias, factor=FACTOR, shortcut=False)
    assert jnp.allclose(out2, ref2, atol=2e-4, rtol=1e-4), "mismatch vs reference (shortcut=False)"

    print("KERNEL_OK")
</pallas_src>

<mosaic_0001>
module attributes {stable_mosaic.version = 11 : i64} {
  func.func @_proj_kernel(%arg0: i32, %arg1: i32, %arg2: memref<64x32xf32, #tpu.memory_space<vmem>>, %arg3: memref<1x32x64xf32, #tpu.memory_space<vmem>>, %arg4: memref<1x1x64xf32, #tpu.memory_space<vmem>>, %arg5: memref<8x1x8x64xf32, #tpu.memory_space<vmem>>) attributes {dimension_semantics = [#tpu.dimension_semantics<parallel>, #tpu.dimension_semantics<arbitrary>], iteration_bounds = array<i64: 2, 2>, scalar_prefetch = 0 : i64, scratch_operands = 0 : i64, tpu.core_type = #tpu.core_type<tc>, window_params = [{transform_indices = @transform_0, window_bounds = array<i64: 64, 32>}, {transform_indices = @transform_1, window_bounds = array<i64: 1, 32, 64>}, {transform_indices = @transform_2, window_bounds = array<i64: 1, 1, 64>}, {transform_indices = @transform_3, window_bounds = array<i64: 8, 1, 8, 64>}]} {
    %c0 = arith.constant 0 : index
    %c0_0 = arith.constant 0 : index
    %0 = vector.load %arg2[%c0, %c0_0] : memref<64x32xf32, #tpu.memory_space<vmem>>, vector<64x32xf32>
    %c0_1 = arith.constant 0 : index
    %c0_2 = arith.constant 0 : index
    %c0_3 = arith.constant 0 : index
    %1 = vector.load %arg3[%c0_1, %c0_2, %c0_3] : memref<1x32x64xf32, #tpu.memory_space<vmem>>, vector<1x32x64xf32>
    %2 = vector.shape_cast %1 : vector<1x32x64xf32> to vector<32x64xf32>
    %cst = arith.constant dense<0.000000e+00> : vector<64x64xf32>
    %3 = tpu.matmul %0, %2, %cst {dimension_numbers = #tpu.dot_dimension_numbers<[1], [0], [0], [1], [0, 0, 1, 1], [], []>} : vector<64x32xf32>, vector<32x64xf32>, vector<64x64xf32> -> vector<64x64xf32>
    %c0_4 = arith.constant 0 : index
    %c0_5 = arith.constant 0 : index
    %c0_6 = arith.constant 0 : index
    %4 = vector.load %arg4[%c0_4, %c0_5, %c0_6] : memref<1x1x64xf32, #tpu.memory_space<vmem>>, vector<1x1x64xf32>
    %5 = vector.shape_cast %4 : vector<1x1x64xf32> to vector<1x64xf32>
    %6 = vector.broadcast %5 : vector<1x64xf32> to vector<64x64xf32>
    %7 = arith.addf %3, %6 : vector<64x64xf32>
    %8 = vector.shape_cast %7 : vector<64x64xf32> to vector<8x1x8x64xf32>
    %c0_7 = arith.constant 0 : index
    %c0_8 = arith.constant 0 : index
    %c0_9 = arith.constant 0 : index
    %c0_10 = arith.constant 0 : index
    %9 = vector.load %arg5[%c0_7, %c0_8, %c0_9, %c0_10] : memref<8x1x8x64xf32, #tpu.memory_space<vmem>>, vector<8x1x8x64xf32>
    tpu.vector_store %arg5[%c0_7, %c0_8, %c0_9, %c0_10], %8 {strides = array<i32>} : memref<8x1x8x64xf32, #tpu.memory_space<vmem>>, vector<8x1x8x64xf32>,
    return
  }
  func.func @transform_0(%arg0: i32, %arg1: i32) -> (i32, i32) {
    %c0_i32 = arith.constant 0 : i32
    %c0_i32_0 = arith.constant 0 : i32
    return %arg0, %c0_i32 : i32, i32
  }
  func.func @transform_1(%arg0: i32, %arg1: i32) -> (i32, i32, i32) {
    %c0_i32 = arith.constant 0 : i32
    %c0_i32_0 = arith.constant 0 : i32
    %c0_i32_1 = arith.constant 0 : i32
    return %arg1, %c0_i32, %c0_i32_0 : i32, i32, i32
  }
  func.func @transform_2(%arg0: i32, %arg1: i32) -> (i32, i32, i32) {
    %c0_i32 = arith.constant 0 : i32
    %c0_i32_0 = arith.constant 0 : i32
    %c0_i32_1 = arith.constant 0 : i32
    return %arg1, %c0_i32, %c0_i32_0 : i32, i32, i32
  }
  func.func @transform_3(%arg0: i32, %arg1: i32) -> (i32, i32, i32, i32) {
    %c0_i32 = arith.constant 0 : i32
    %c0_i32_0 = arith.constant 0 : i32
    %c0_i32_1 = arith.constant 0 : i32
    return %arg0, %arg1, %c0_i32, %c0_i32_0 : i32, i32, i32, i32
  }
}

</mosaic_0001>

<bundles_post_ra>
// kernel: tpu_custom_call.1
= control target key start
LH: loop header
LB: loop body
LE: loop exit
PB: predicated region body
PF: predicated region fallthrough
CT: control target
= control target key end

     0   :  { %8 = vsyncpa [#allocation3], 0  ;;  %s924_s0 = inlined_call_operand.vmem [shape: f32[128,32], index: 0, kind: input, shape index: {}]   ;;  %s925_s1 = inlined_call_operand.vmem [shape: f32[2,32,64], index: 1, kind: input, shape index: {}]   ;;  %s926_s2 = inlined_call_operand.vmem [shape: f32[2,1,64], index: 2, kind: input, shape index: {}]   ;;  %s927_s3 = inlined_call_operand.hbm [shape: f32[16,2,8,64], index: 3, kind: output, shape index: {}]  }
   0x1   :  { %10 = vsyncpa [#allocation3 + $0x1], 0  ;;  %s755_s12 = smov 0   ;;  %s757_s13 = smov 0  }
   0x2   :  { %s759_s14 = smov 0   ;;  %s761_s15 = smov 0  }
   0x3   :  { %s763_s16 = smov 0   ;;  %s765_s17 = smov 0  }
   0x4   :  { %s767_s18 = smov 0   ;;  %s769_s19 = smov 0  }
   0x5 LB: > { %s490_s20 = sadd.s32 4294967295, %s729_s19   ;;  %s491_s21 = sadd.s32 4294967294, %s729_s19   ;;  %s729_s19 = sphi %s769_s19, %s16_s19   ;;  %s725_s18 = sphi %s767_s18, %s936_s18   ;;  %s721_s17 = sphi %s765_s17, %s935_s17   ;;  %s717_s16 = sphi %s763_s16, %s934_s16   ;;  %s713_s15 = sphi %s761_s15, %s933_s15   ;;  %s709_s14 = sphi %s759_s14, %s932_s14   ;;  %s705_s13 = sphi %s757_s13, %s931_s13   ;;  %s701_s12 = sphi %s755_s12, %s930_s12  }
   0x6   : > { %s25_s22 = sadd.s32 1, %s721_s17  ;;  %s28_s23 = sadd.s32 1, %s725_s18 }
   0x7   : > { %p26_p0 = scmp.ge.s32.totalorder %s25_s22, 2  ;;  %p125_p1 = scmp.ne.s32.totalorder %s709_s14, %s705_s13 }
   0x8   : > { %p126_p2 = scmp.eq.s32.totalorder %s490_s20, 3  ;;  %p131_p5 = scmp.ne.s32.totalorder %s705_s13, %s701_s12 }
   0x9   : > { %s938_s22 = smov (%p26_p0, %s25_s22), 0  ;;  %s940_s23 = smov (!%p26_p0, %s28_s23), %s725_s18 }
   0xa   : > { %s111_s24 = ssub.s32 %s721_s17, %s938_s22  ;;  %p806_p3 = por %p126_p2, %p125_p1 }
   0xb   : > { %p30_p4 = scmp.ge.s32.totalorder %s940_s23, 2  ;;  %p132_p6 = scmp.eq.s32.totalorder %s491_s21, 3 }
   0xc   : > { %p494_p7 = scmp.ge.s32.totalorder %s729_s19, 1  ;;  %p173_p9 = scmp.lt.s32.totalorder %s729_s19, 5 }
   0xd   : > { %s942_s23 = smov (%p30_p4, %s940_s23), 0  ;;  %p815_p8 = por %p132_p6, %p131_p5 }
   0xe   : > { %s110_s27 = ssub.s32 %s725_s18, %s942_s23  ;;  %s115_s28 = sadd.s32 1, %s709_s14 }
   0xf   : > { %s112_s29 = sor.u32 %s111_s24, %s110_s27  ;;  %p174_p10 = pnand %p494_p7, %p173_p9 }
  0x10   : > { %p113_p11 = scmp.eq.s32.totalorder %s112_s29, 0  ;;  %p211_p12 = scmp.lt.s32.totalorder (!%p174_p10), %s713_s15, 1  ;;  %vm239_vm0 = vcmask (!%p174_p10), 261120   ;;  %vm369_vm1 = vcmask (!%p174_p10), 523264  }
  0x11   : > { %177 = sbr.rel (%p174_p10) target bundleno = 275 (0x113), region = 32  ;;  %s496_s4 = sshll.u32 (!%p174_p10), %s717_s16, 3 }
  0x12   : > { %s824_s30 = scalar_select %p113_p11, %s709_s14, %s115_s28  }
  0x13   : > { %p206_p13 = scmp.lt.s32.totalorder (!%p174_p10), %s496_s4, 15  ;;  %s202_s24 = sand.u32 (!%p174_p10), 1, %s705_s13  }
  0x14   : > { %s872_s11 = scalar_lea.sflag (!%p174_p10), [#allocation3], %s202_s24 }
  0x18   : > { %s829_s5 = scalar_select %p211_p12, %s713_s15, 1 }
  0x19   : > { %s944_s4 = smov (!%p206_p13, %s496_s4), 15 }
  0x1a   : > { %s515_s6 = sshll.u32 %s829_s5, 5  ;;  %s497_s10 = sshll.u32 %s944_s4, 3 }
  0x1b   : > { %s215_s9 = scalar_lea.vmem %s925_s1, %s515_s6  ;;  %s209_s21 = scalar_lea.vmem %s924_s0, %s497_s10 }
  0x1c   : > { %v228_v0 = vld [vmem:[%s215_s9] sm:$0xff]  ;;  %v229_v1 = vld [vmem:[%s215_s9 + $0x8] sm:$0xff]  ;;  %v230_v2 = vld [vmem:[%s215_s9 + $0x10] sm:$0xff]  ;;  %s218_s29 = scalar_lea.vmem %s926_s2, %s829_s5  ;;  %s516_s4 = sshll.u32 %s717_s16, 4 }
  0x1d   : > { %v549_v3 = vpack.c.bf16 %v229_v1, %v228_v0  ;;  %v231_v4 = vld [vmem:[%s215_s9 + $0x18] sm:$0xff]  ;;  %v220_v5 = vld [vmem:[%s209_s21] sm:$0xff]  ;;  %v221_v8 = vld [vmem:[%s209_s21 + $0x8] sm:$0xff]  ;;  %s495_s6 = sshll.u32 %s202_s24, 6  ;;  %s391_s7 = sadd.s32 %s713_s15, %s516_s4 }
  0x1e   : > { %v224_v6 = vld [vmem:[%s209_s21 + $0x20] sm:$0xff]  ;;  %v553_v7 = vpack.c.bf16 %v231_v4, %v230_v2  ;;  %537 = vmatprep.mubr.msk.f32.mxu0 %vm239_vm0, %v220_v5  ;;  %v225_v9 = vld [vmem:[%s209_s21 + $0x28] sm:$0xff]  ;;  %v222_v10 = vld [vmem:[%s209_s21 + $0x10] sm:$0xff]  ;;  %s204_s8 = scalar_lea.vmem [#allocation2], %s495_s6  ;;  %s512_s10 = sshll.u32 %s391_s7, 7 }
  0x1f   : > { %543 = vmatprep.mubr.msk.f32.mxu1 %vm239_vm0, %v224_v6  ;;  %550 = vmatprep.subr.bf16.mxu0 %v549_v3  ;;  %v226_v11 = vld [vmem:[%s209_s21 + $0x30] sm:$0xff]  ;;  %v223_v12 = vld [vmem:[%s209_s21 + $0x18] sm:$0xff]  ;;  %v500_v14 = vld [vmem:[%s218_s29] ss:$0 sm:$0xff]  ;;  %s394_s9 = sshll.u32 %s204_s8, 4  ;;  %s864_s5 = scalar_lea.hbm %s927_s3, %s512_s10  ;;  %s857_s9 = int_to_ptr.vmem [resolvable:$true] %s394_s9 }
  0x20   : > { %557 = vmatprep.subr.bf16.mxu1 %v549_v3  ;;  %552 = vmatpush3.bf16.msra.mxu0 %v549_v3  ;;  %v227_v13 = vld [vmem:[%s209_s21 + $0x38] sm:$0xff]  ;;  %s635_s20 = scalar_lea.vmem %s857_s9, 1024  ;;  %s731_s21 = smov [#allocation2]  }
  0x21   : > { %559 = vmatpush3.bf16.msra.mxu1 %v549_v3  ;;  %554 = vmatprep.subr.bf16.mxu0 %v553_v7  ;;  %p636_p0 = scmp.ne.s32.totalorder %s857_s9, %s635_s20  ;;  %s639_s27 = sshll.u32 %s731_s21, 4  ;;  %s640_s27 = int_to_ptr.vmem [resolvable:$false] %s639_s27 }
  0x22   : > { %558 = vmatprep.subr.bf16.mxu1 %v553_v7  ;;  %s641_s28 = scalar_lea.vmem %s640_s27, 2048  ;;  %p642_p4 = scmp.lt.s32.totalorder %s857_s9, %s640_s27 }
  0x23   : > { %p637_p1 = pnand %p636_p0, %p806_p3  ;;  %p643_p5 = scmp.lt.s32.totalorder %s641_s28, %s635_s20 }
  0x24   : > { %556 = vmatpush3.bf16.msra.mxu0 %v553_v7 }
  0x25   : > { %560 = vmatpush3.bf16.msra.mxu1 %v553_v7  ;;  %p638_p2 = pneg %p637_p1  ;;  %p644_p6 = por %p643_p5, %p642_p4 }
  0x27   : > { %538 = vmatmul.mubr.msk.f32.vlgmr.msra.gmra.mrb[0].mxu0 %vm239_vm0, %v221_v8  ;;  %p645_p7 = pnand %p644_p6, %p638_p2 }
  0x28   : > { %544 = vmatmul.mubr.msk.f32.vlgmr.msra.gmra.mrb[0].mxu1 %vm239_vm0, %v225_v9  ;;  %540 = vmatprep.mubr.msk.f32.mxu0 %vm239_vm0, %v222_v10 }
  0x29   : > { %546 = vmatprep.mubr.msk.f32.mxu1 %vm239_vm0, %v226_v11 }
  0x2b   : > { %541 = vmatmul.mubr.msk.f32.gmra.mrb[2].mxu0 %vm239_vm0, %v223_v12 }
  0x2c   : > { %547 = vmatmul.mubr.msk.f32.gmra.mrb[2].mxu1 %vm239_vm0, %v227_v13 }
  0xfa   : > { %v539_v15 = vpop.f32.mrb[0].mxu0 }
  0xfb   : > { %v545_v16 = vpop.f32.mrb[0].mxu1  ;;  %v336_v17 = vadd.f32 %v539_v15, %v500_v14  ;;  %v330_v19 = vpop.f32.mrb[1].mxu0 }
  0xfc   : > { %v356_v18 = vadd.f32 %v545_v16, %v500_v14  ;;  %v350_v20 = vpop.f32.mrb[1].mxu1  ;;  %v331_v21 = vadd.f32 %v500_v14, %v330_v19 }
  0xfd   : > { %v351_v22 = vadd.f32 %v500_v14, %v350_v20  ;;  %371 = vst.msk [vmem:[%s204_s8 + $0x8] sm:$0xff] %vm369_vm1, %v336_v17 }
  0xfe   : > { %375 = vst.msk [vmem:[%s204_s8 + $0x28] sm:$0xff] %vm369_vm1, %v356_v18  ;;  %370 = vst.msk [vmem:[%s204_s8] sm:$0xff] %vm369_vm1, %v331_v21  ;;  %v542_v23 = vpop.f32.mrb[2].mxu0 }
  0xff   : > { %374 = vst.msk [vmem:[%s204_s8 + $0x20] sm:$0xff] %vm369_vm1, %v351_v22  ;;  %v548_v24 = vpop.f32.mrb[2].mxu1  ;;  %v346_v25 = vadd.f32 %v542_v23, %v500_v14  ;;  %v340_v27 = vpop.f32.mrb[3].mxu0 }
 0x100   : > { %v366_v26 = vadd.f32 %v548_v24, %v500_v14  ;;  %v360_v28 = vpop.f32.mrb[3].mxu1  ;;  %v341_v29 = vadd.f32 %v500_v14, %v340_v27 }
 0x101   : > { %v361_v30 = vadd.f32 %v500_v14, %v360_v28  ;;  %373 = vst.msk [vmem:[%s204_s8 + $0x18] sm:$0xff] %vm369_vm1, %v346_v25 }
 0x102   : > { %377 = vst.msk [vmem:[%s204_s8 + $0x38] sm:$0xff] %vm369_vm1, %v366_v26  ;;  %372 = vst.msk [vmem:[%s204_s8 + $0x10] sm:$0xff] %vm369_vm1, %v341_v29 }
 0x103   : > { %376 = vst.msk [vmem:[%s204_s8 + $0x30] sm:$0xff] %vm369_vm1, %v361_v30 }
 0x104   : > { %648 = shalt.err (!%p645_p7)
}
 0x105   : > { %s649_s24 = scalar_lea.hbm %s864_s5, 1024  ;;  %s653_s6 = scalar_lea.hbm %s927_s3, 4096 }
 0x106   : > { %p650_p9 = scmp.ne.s32.totalorder %s864_s5, %s649_s24  ;;  %p654_p12 = scmp.lt.u32.totalorder %s864_s5, %s927_s3 }
 0x107   : > { %p655_p13 = scmp.lt.u32.totalorder %s653_s6, %s649_s24  ;;  %p657_p1 = scmp.lt.u32.totalorder %s649_s24, %s864_s5 }
 0x108   : > { %p651_p10 = pnand %p650_p9, %p806_p3 }
 0x109   : > { %p656_p0 = por %p655_p13, %p654_p12 }
 0x10a   : > { %p652_p11 = pneg %p651_p10 }
 0x10b   : > { %p658_p2 = por %p657_p1, %p656_p0 }
 0x10d   : > { %p659_p4 = pnand %p658_p2, %p652_p11 }
 0x10f   : > { %662 = shalt.err (!%p659_p4)
}
 0x110   : > { %s732_s10 = smov 128   ;;  %s733_s15 = smov 256  }
 0x111   : > { %s734_s16 = smov 8  }
 0x112   : > { %561 = dma.vmem_to_hbm [thread:$0]  (%p806_p3), %s857_s9, 1024, %s864_s5, %s872_s11, %s732_s10, %s733_s15, %s734_s16  }
 0x113 PF: > { %p567_p5 = scmp.ge.s32.totalorder %s729_s19, 2  ;;  %s409_s20 = sand.u32 1, %s701_s12  }
 0x114   : > { %s410_s21 = scalar_lea.sflag [#allocation3], %s409_s20 }
 0x115   : > { %p564_p6 = pnand %p567_p5, %p815_p8 }
 0x117   : > { %696 = dma.done.wait (!%p564_p6), %s410_s21, 1024  }
 0x118   : > { %698 = vsyncadd (!%p564_p6), %s410_s21, 4294966272  ;;  %s16_s19 = sadd.s32 1, %s729_s19   ;;  %s930_s12 = smov %s705_s13 }
 0x119   : > { %p13_p7 = scmp.ge.s32.totalorder %s16_s19, 6   ;;  %s931_s13 = smov %s709_s14 }
 0x11a   : > { %s932_s14 = smov %s824_s30  ;;  %s933_s15 = smov %s721_s17 }
 0x11b   : > { %s934_s16 = smov %s725_s18  ;;  %s935_s17 = smov %s938_s22 }
 0x11c   : > { %s936_s18 = smov %s942_s23  ;;  %15 = sbr.rel (!%p13_p7) target bundleno = 5 (0x5), region = 73 }
 0x123   :  { %415 = vsyncpa [#allocation3], 1 }
 0x124   :  { %417 = vsyncpa [#allocation3 + $0x1], 1 }

</bundles_post_ra>
